<compile_context>
chip_gen: v7x
topology: tpu7x:2x2x1
jax: 0.10.0
libtpu: 0.0.40
codegen_flags: <defaults>
</compile_context>

<pallas_src>
import jax
import jax.numpy as jnp
from jax.experimental import pallas as pl
from jax.experimental.pallas import tpu as pltpu


def _patch_embed_kernel(patches_ref, w_ref, bias_pos_ref, cls_pos_ref, out_ref):
    """Project one block of nb images and write all (1+N) token rows.

    patches_ref:  (nb, N, K)   bf16  -- flattened patches of nb images
    w_ref:        (K, E)       bf16  -- projection weight, VMEM-resident
    bias_pos_ref: (1, E)       f32   -- conv bias + position encoding (fused)
    cls_pos_ref:  (1, E)       f32   -- cls token + position encoding (fused)
    out_ref:      (nb, 1+N, E)       -- output tokens (row 0 = cls)
    """
    nb, N, _ = patches_ref.shape
    out_dtype = out_ref.dtype
    cls_row = cls_pos_ref[...].astype(out_dtype)      # (1, E)
    bias_row = bias_pos_ref[...]                       # (1, E) f32
    for b in range(nb):                                # static unroll, nb small
        out_ref[b, pl.ds(0, 1), :] = cls_row
        proj = jnp.dot(patches_ref[b], w_ref[...],
                       preferred_element_type=jnp.float32)     # (N, E) f32 acc
        out_ref[b, pl.ds(1, N), :] = (proj + bias_row).astype(out_dtype)


def patch_embedding_forward(x, conv_w, conv_b, cls_token, pos_enc, patch_size,
                            out_dtype=jnp.bfloat16):
    """Equivalent of Patch_Embedding.forward (ViT mode, eval: dropout = identity).

    x:         (B, 3, H, W)   NCHW float32
    conv_w:    (E, 3, P, P)   Conv2d weight
    conv_b:    (E,)           Conv2d bias
    cls_token: (1, 1, E)
    pos_enc:   (1, 1, E)      single row broadcast over all tokens (as in the
                              PyTorch module, which uses a (1,1,E) parameter)
    returns:   (B, 1 + (H//P)*(W//P), E) in out_dtype (default bf16).
    """
    B, C, H, W = x.shape
    P = patch_size
    E = conv_w.shape[0]
    Hp, Wp = H // P, W // P
    N = Hp * Wp
    K = C * P * P
    S = 1 + N

    # --- glue: ONE fused XLA pass over x: NCHW -> (B, N, K) patches, bf16,
    # flattened in (c, kh, kw) order to match the Conv2d weight layout.
    patches = x.reshape(B, C, Hp, P, Wp, P)
    patches = patches.transpose(0, 2, 4, 1, 3, 5)            # (B, Hp, Wp, C, P, P)
    patches = patches.reshape(B, N, K).astype(jnp.bfloat16)

    w_mat = conv_w.reshape(E, K).T.astype(jnp.bfloat16)      # (K, E), cols (c,kh,kw)

    pos_row = pos_enc.reshape(1, E).astype(jnp.float32)
    bias_pos = conv_b.reshape(1, E).astype(jnp.float32) + pos_row   # fused once
    cls_pos = cls_token.reshape(1, E).astype(jnp.float32) + pos_row

    # --- block sizing: pack nb images per grid step so each MXU tile has up to
    # ~2K token rows (amortizes the ~0.35us per-step overhead) while keeping
    # the double-buffered VMEM footprint under ~40 MiB (v7x headroom).
    out_bytes = jnp.dtype(out_dtype).itemsize

    def vmem_bytes(nb):
        patches_blk = nb * N * K * 2
        out_blk = nb * S * E * out_bytes
        resident = K * E * 2 + 2 * E * 4
        return 2 * (patches_blk + out_blk + resident)        # double-buffered

    nb = 1
    for d in range(1, B + 1):
        if B % d == 0 and d * N <= 2048 and vmem_bytes(d) <= 40 * 1024 * 1024:
            nb = d

    vmem_limit = int(min(48 * 1024 * 1024,
                         max(2 * vmem_bytes(nb), 8 * 1024 * 1024)))

    grid = (B // nb,)
    cost = pl.CostEstimate(
        flops=2 * B * N * K * E,
        transcendentals=0,
        bytes_accessed=(B * N * K * 2 + K * E * 2
                        + B * S * E * out_bytes + 4 * E * 4),
    )

    out = pl.pallas_call(
        _patch_embed_kernel,
        out_shape=jax.ShapeDtypeStruct((B, S, E), out_dtype),
        grid_spec=pltpu.PrefetchScalarGridSpec(
            num_scalar_prefetch=0,
            grid=grid,
            in_specs=[
                pl.BlockSpec((nb, N, K), lambda i: (i, 0, 0)),   # patches tile
                pl.BlockSpec((K, E), lambda i: (0, 0)),          # weight, resident
                pl.BlockSpec((1, E), lambda i: (0, 0)),          # bias+pos, resident
                pl.BlockSpec((1, E), lambda i: (0, 0)),          # cls+pos, resident
            ],
            out_specs=pl.BlockSpec((nb, S, E), lambda i: (i, 0, 0)),
        ),
        compiler_params=pltpu.CompilerParams(
            # TODO(synk): on v7x, use pltpu.CORE_PARALLEL on this axis (or an
            # explicit pl.core_map over create_tensorcore_mesh) and verify in
            # the trace that both TensorCores are busy.
            dimension_semantics=("parallel",),
            vmem_limit_bytes=vmem_limit,
        ),
        cost_estimate=cost,
    )(patches, w_mat, bias_pos, cls_pos)

    # TODO(synk): nn.Dropout is identity in eval mode; training-mode dropout
    # (pltpu.prng_random_bits masking) is not implemented here.
    return out


if __name__ == "__main__":
    key = jax.random.PRNGKey(0)
    k1, k2, k3, k4, k5 = jax.random.split(key, 5)

    # Small, module-consistent shapes: batch=2, 3-channel 16x16 image,
    # patch_size=4 -> 16 patches, embed_dim=32.
    B, C, H, W = 2, 3, 16, 16
    patch_size = 4
    embed_dim = 32

    x = jax.random.normal(k1, (B, C, H, W), dtype=jnp.float32)
    conv_w = jax.random.normal(k2, (embed_dim, C, patch_size, patch_size),
                               dtype=jnp.float32) * 0.05
    conv_b = jax.random.normal(k3, (embed_dim,), dtype=jnp.float32) * 0.05
    cls_token = jax.random.normal(k4, (1, 1, embed_dim), dtype=jnp.float32)
    pos_enc = jax.random.normal(k5, (1, 1, embed_dim), dtype=jnp.float32)

    out = patch_embedding_forward(x, conv_w, conv_b, cls_token, pos_enc,
                                  patch_size)
    out = jax.block_until_ready(out)

    expected_seq = 1 + (H // patch_size) * (W // patch_size)
    assert out.shape == (B, expected_seq, embed_dim), out.shape

    # Pure-JAX f32 reference of the same math (kernel uses bf16 operands and a
    # bf16 output store, so tolerances are bf16-level).
    ref_patches = x.reshape(B, C, H // patch_size, patch_size,
                            W // patch_size, patch_size)
    ref_patches = ref_patches.transpose(0, 2, 4, 1, 3, 5).reshape(
        B, -1, C * patch_size * patch_size)
    ref_tokens = ref_patches @ conv_w.reshape(embed_dim, -1).T + conv_b
    ref_cls = jnp.broadcast_to(cls_token, (B, 1, embed_dim))
    ref = jnp.concatenate([ref_cls, ref_tokens], axis=1) + pos_enc

    out_f32 = out.astype(jnp.float32)
    max_err = float(jnp.max(jnp.abs(out_f32 - ref)))
    assert jnp.allclose(out_f32, ref, atol=5e-2, rtol=5e-2), max_err

    print("KERNEL_OK")
</pallas_src>

<mosaic_0001>
module attributes {stable_mosaic.version = 11 : i64} {
  func.func @_patch_embed_kernel(%arg0: i32, %arg1: memref<2x16x48xbf16, #tpu.memory_space<vmem>>, %arg2: memref<48x32xbf16, #tpu.memory_space<vmem>>, %arg3: memref<1x32xf32, #tpu.memory_space<vmem>>, %arg4: memref<1x32xf32, #tpu.memory_space<vmem>>, %arg5: memref<2x17x32xbf16, #tpu.memory_space<vmem>>) attributes {dimension_semantics = [#tpu.dimension_semantics<parallel>], iteration_bounds = array<i64: 1>, scalar_prefetch = 0 : i64, scratch_operands = 0 : i64, tpu.core_type = #tpu.core_type<tc>, window_params = [{transform_indices = @transform_0, window_bounds = array<i64: 2, 16, 48>}, {pipeline_mode = #tpu.pipeline_mode<synchronous>, transform_indices = @transform_1, window_bounds = array<i64: 48, 32>}, {pipeline_mode = #tpu.pipeline_mode<synchronous>, transform_indices = @transform_2, window_bounds = array<i64: 1, 32>}, {pipeline_mode = #tpu.pipeline_mode<synchronous>, transform_indices = @transform_3, window_bounds = array<i64: 1, 32>}, {transform_indices = @transform_4, window_bounds = array<i64: 2, 17, 32>}]} {
    %c0 = arith.constant 0 : index
    %c0_0 = arith.constant 0 : index
    %0 = vector.load %arg4[%c0, %c0_0] : memref<1x32xf32, #tpu.memory_space<vmem>>, vector<1x32xf32>
    %1 = arith.truncf %0 : vector<1x32xf32> to vector<1x32xbf16>
    %c0_1 = arith.constant 0 : index
    %c0_2 = arith.constant 0 : index
    %2 = vector.load %arg3[%c0_1, %c0_2] : memref<1x32xf32, #tpu.memory_space<vmem>>, vector<1x32xf32>
    %c0_3 = arith.constant 0 : index
    %c0_4 = arith.constant 0 : index
    %c0_5 = arith.constant 0 : index
    %3 = vector.load %arg5[%c0_3, %c0_4, %c0_5] : memref<2x17x32xbf16, #tpu.memory_space<vmem>>, vector<1x1x32xbf16>
    %4 = vector.shape_cast %3 : vector<1x1x32xbf16> to vector<1x32xbf16>
    %5 = vector.shape_cast %1 : vector<1x32xbf16> to vector<1x1x32xbf16>
    tpu.vector_store %arg5[%c0_3, %c0_4, %c0_5], %5 {strides = array<i32>} : memref<2x17x32xbf16, #tpu.memory_space<vmem>>, vector<1x1x32xbf16>,
    %c0_6 = arith.constant 0 : index
    %c0_7 = arith.constant 0 : index
    %c0_8 = arith.constant 0 : index
    %6 = vector.load %arg1[%c0_6, %c0_7, %c0_8] : memref<2x16x48xbf16, #tpu.memory_space<vmem>>, vector<1x16x48xbf16>
    %7 = vector.shape_cast %6 : vector<1x16x48xbf16> to vector<16x48xbf16>
    %c0_9 = arith.constant 0 : index
    %c0_10 = arith.constant 0 : index
    %8 = vector.load %arg2[%c0_9, %c0_10] : memref<48x32xbf16, #tpu.memory_space<vmem>>, vector<48x32xbf16>
    %cst = arith.constant dense<0.000000e+00> : vector<16x32xf32>
    %9 = tpu.matmul %7, %8, %cst {dimension_numbers = #tpu.dot_dimension_numbers<[1], [0], [0], [1], [0, 0, 1, 1], [], []>} : vector<16x48xbf16>, vector<48x32xbf16>, vector<16x32xf32> -> vector<16x32xf32>
    %10 = vector.broadcast %2 : vector<1x32xf32> to vector<16x32xf32>
    %11 = arith.addf %9, %10 : vector<16x32xf32>
    %12 = arith.truncf %11 : vector<16x32xf32> to vector<16x32xbf16>
    %c0_11 = arith.constant 0 : index
    %c1 = arith.constant 1 : index
    %c0_12 = arith.constant 0 : index
    %13 = vector.load %arg5[%c0_11, %c1, %c0_12] : memref<2x17x32xbf16, #tpu.memory_space<vmem>>, vector<1x16x32xbf16>
    %14 = vector.shape_cast %13 : vector<1x16x32xbf16> to vector<16x32xbf16>
    %15 = vector.shape_cast %12 : vector<16x32xbf16> to vector<1x16x32xbf16>
    tpu.vector_store %arg5[%c0_11, %c1, %c0_12], %15 {strides = array<i32>} : memref<2x17x32xbf16, #tpu.memory_space<vmem>>, vector<1x16x32xbf16>,
    %c1_13 = arith.constant 1 : index
    %c0_14 = arith.constant 0 : index
    %c0_15 = arith.constant 0 : index
    %16 = vector.load %arg5[%c1_13, %c0_14, %c0_15] : memref<2x17x32xbf16, #tpu.memory_space<vmem>>, vector<1x1x32xbf16>
    %17 = vector.shape_cast %16 : vector<1x1x32xbf16> to vector<1x32xbf16>
    %18 = vector.shape_cast %1 : vector<1x32xbf16> to vector<1x1x32xbf16>
    tpu.vector_store %arg5[%c1_13, %c0_14, %c0_15], %18 {strides = array<i32>} : memref<2x17x32xbf16, #tpu.memory_space<vmem>>, vector<1x1x32xbf16>,
    %c1_16 = arith.constant 1 : index
    %c0_17 = arith.constant 0 : index
    %c0_18 = arith.constant 0 : index
    %19 = vector.load %arg1[%c1_16, %c0_17, %c0_18] : memref<2x16x48xbf16, #tpu.memory_space<vmem>>, vector<1x16x48xbf16>
    %20 = vector.shape_cast %19 : vector<1x16x48xbf16> to vector<16x48xbf16>
    %c0_19 = arith.constant 0 : index
    %c0_20 = arith.constant 0 : index
    %21 = vector.load %arg2[%c0_19, %c0_20] : memref<48x32xbf16, #tpu.memory_space<vmem>>, vector<48x32xbf16>
    %cst_21 = arith.constant dense<0.000000e+00> : vector<16x32xf32>
    %22 = tpu.matmul %20, %21, %cst_21 {dimension_numbers = #tpu.dot_dimension_numbers<[1], [0], [0], [1], [0, 0, 1, 1], [], []>} : vector<16x48xbf16>, vector<48x32xbf16>, vector<16x32xf32> -> vector<16x32xf32>
    %23 = vector.broadcast %2 : vector<1x32xf32> to vector<16x32xf32>
    %24 = arith.addf %22, %23 : vector<16x32xf32>
    %25 = arith.truncf %24 : vector<16x32xf32> to vector<16x32xbf16>
    %c1_22 = arith.constant 1 : index
    %c1_23 = arith.constant 1 : index
    %c0_24 = arith.constant 0 : index
    %26 = vector.load %arg5[%c1_22, %c1_23, %c0_24] : memref<2x17x32xbf16, #tpu.memory_space<vmem>>, vector<1x16x32xbf16>
    %27 = vector.shape_cast %26 : vector<1x16x32xbf16> to vector<16x32xbf16>
    %28 = vector.shape_cast %25 : vector<16x32xbf16> to vector<1x16x32xbf16>
    tpu.vector_store %arg5[%c1_22, %c1_23, %c0_24], %28 {strides = array<i32>} : memref<2x17x32xbf16, #tpu.memory_space<vmem>>, vector<1x16x32xbf16>,
    return
  }
  func.func @transform_0(%arg0: i32) -> (i32, i32, i32) {
    %c0_i32 = arith.constant 0 : i32
    %c0_i32_0 = arith.constant 0 : i32
    %c0_i32_1 = arith.constant 0 : i32
    return %arg0, %c0_i32, %c0_i32_0 : i32, i32, i32
  }
  func.func @transform_1(%arg0: i32) -> (i32, i32) {
    %c0_i32 = arith.constant 0 : i32
    %c0_i32_0 = arith.constant 0 : i32
    %c0_i32_1 = arith.constant 0 : i32
    return %c0_i32, %c0_i32_0 : i32, i32
  }
  func.func @transform_2(%arg0: i32) -> (i32, i32) {
    %c0_i32 = arith.constant 0 : i32
    %c0_i32_0 = arith.constant 0 : i32
    %c0_i32_1 = arith.constant 0 : i32
    return %c0_i32, %c0_i32_0 : i32, i32
  }
  func.func @transform_3(%arg0: i32) -> (i32, i32) {
    %c0_i32 = arith.constant 0 : i32
    %c0_i32_0 = arith.constant 0 : i32
    %c0_i32_1 = arith.constant 0 : i32
    return %c0_i32, %c0_i32_0 : i32, i32
  }
  func.func @transform_4(%arg0: i32) -> (i32, i32, i32) {
    %c0_i32 = arith.constant 0 : i32
    %c0_i32_0 = arith.constant 0 : i32
    %c0_i32_1 = arith.constant 0 : i32
    return %arg0, %c0_i32, %c0_i32_0 : i32, i32, i32
  }
}

</mosaic_0001>

<bundles_post_ra>
// kernel: tpu_custom_call.1
= control target key start
LH: loop header
LB: loop body
LE: loop exit
PB: predicated region body
PF: predicated region fallthrough
CT: control target
= control target key end

     0   :  { %v331_v0 = vmov 0.0   ;;  %vm332_vm0 = vmmov 0   ;;  %vm21_vm1 = vcmask 253952   ;;  %vm22_vm2 = vsmask.f32 256  ;;  %s463_s1 = inlined_call_operand.vmem [shape: bf16[48,32], index: 1, kind: input, shape index: {}]   ;;  %s464_s0 = inlined_call_operand.vmem [shape: bf16[2,16,48], index: 0, kind: input, shape index: {}]   ;;  %s465_s3 = inlined_call_operand.vmem [shape: f32[1,32], index: 3, kind: input, shape index: {}]   ;;  %s466_s4 = inlined_call_operand.vmem [shape: bf16[2,17,32], index: 4, kind: output, shape index: {}]   ;;  %s467_s2 = inlined_call_operand.vmem [shape: f32[1,32], index: 2, kind: input, shape index: {}]  }
   0x1   :  { %301 = vmatprep.subr.bf16.mxu0 %v331_v0  ;;  %311 = vmatprep.subr.bf16.mxu1 %v331_v0  ;;  %v323_v1 = vld [vmem:[%s463_s1] sm:$0xff]   ;;  %v325_v3 = vld [vmem:[%s463_s1 + $0x8] sm:$0xff]   ;;  %v327_v5 = vld [vmem:[%s463_s1 + $0x10] sm:$0xff]   ;;  %vm64_vm4 = vcmask 392192   ;;  %vm137_vm5 = vcmask 257024  }
   0x2   :  { %v324_v2 = vld [vmem:[%s463_s1] sm:$0xff]   ;;  %307 = vmatprep.mubr.msk.bf16.mxu0 %vm332_vm0, %v331_v0  ;;  %317 = vmatprep.mubr.msk.bf16.mxu1 %vm332_vm0, %v331_v0  ;;  %v326_v4 = vld [vmem:[%s463_s1 + $0x8] sm:$0xff]   ;;  %v328_v6 = vld [vmem:[%s463_s1 + $0x10] sm:$0xff]   ;;  %vm138_vm6 = vsmask.f32 7938 }
   0x3   :  { %302 = vmatpush3.bf16.msra.mxu0 %v323_v1  ;;  %312 = vmatpush3.bf16.msra.mxu1 %v324_v2  ;;  %v18_v7 = vld [vmem:[%s465_s3] sm:$0x1]  ;;  %vm383_vm3 = vmand %vm21_vm1, %vm22_vm2  ;;  %v330_v12 = vld [vmem:[%s464_s0 + $0x8] sm:$0xff]   ;;  %vm115_vm7 = vsmask.f32 4368 }
   0x4   :  { %303 = vmatprep.subr.bf16.mxu0 %v331_v0  ;;  %313 = vmatprep.subr.bf16.mxu1 %v331_v0  ;;  %v329_v8 = vld [vmem:[%s464_s0] sm:$0xff]   ;;  %v19_v9 = vpack.c.bf16 %v18_v7, %v18_v7  ;;  %v273_v14 = vld [vmem:[%s466_s4 + $0xc] sm:$0x1]  ;;  %vm410_vm8 = vmand %vm137_vm5, %vm138_vm6 }
   0x5   :  { %v24_v11 = vld [vmem:[%s466_s4] sm:$0x1]  ;;  %vm421_vm9 = vmor %vm22_vm2, %vm115_vm7  ;;  %v145_v49 = vld [vmem:[%s466_s4 + $0x8] sm:$0x1] }
   0x6   :  { %v25_v13 = vsel %vm383_vm3, %v19_v9, %v24_v11  ;;  %v150_v15 = vsel %vm383_vm3, %v19_v9, %v273_v14  ;;  %v265_v16 = vld [vmem:[%s467_s2] ss:$0 sm:$0xff]  ;;  %v287_v56 = vld [vmem:[%s466_s4 + $0x14] sm:$0x1] }
   0x7   :  { %304 = vmatpush3.bf16.msra.mxu0 %v325_v3  ;;  %314 = vmatpush3.bf16.msra.mxu1 %v326_v4  ;;  %26 = vst [vmem:[%s466_s4] sm:$0x1] %v25_v13  ;;  %274 = vst [vmem:[%s466_s4 + $0xc] sm:$0x1] %v150_v15 }
   0x8   :  { %305 = vmatprep.subr.bf16.mxu0 %v331_v0  ;;  %315 = vmatprep.subr.bf16.mxu1 %v331_v0 }
   0xb   :  { %306 = vmatpush3.bf16.msra.mxu0 %v327_v5  ;;  %316 = vmatpush3.bf16.msra.mxu1 %v328_v6 }
   0xe   :  { %308 = vmatmul.mubr.msk.bf16.vlgmr.msra.gmra.mrb[0].mxu0 %vm64_vm4, %v329_v8  ;;  %318 = vmatmul.mubr.msk.bf16.vlgmr.msra.gmra.mrb[0].mxu1 %vm64_vm4, %v330_v12  ;;  %v140_v39 = vld [vmem:[%s466_s4] sm:$0xf]  ;;  %v284_v44 = vld [vmem:[%s466_s4 + $0xc] sm:$0xf] }
  0xe1   :  { %v102_v17 = vpop.f32.mrb[0].mxu0  ;;  %v221_v19 = vpop.f32.mrb[0].mxu1 }
  0xe2   :  { %v103_v18 = vadd.f32 %v265_v16, %v102_v17  ;;  %v309_v20 = vpop.f32.mrb[1].mxu0  ;;  %v222_v21 = vadd.f32 %v265_v16, %v221_v19  ;;  %v319_v22 = vpop.f32.mrb[1].mxu1 }
  0xe3   :  { %v105_v23 = vpop.f32.mrb[2].mxu0  ;;  %v224_v26 = vpop.f32.mrb[2].mxu1 }
  0xe4   :  { %v289_v24 = vpack.c.bf16 %v103_v18, %v103_v18  ;;  %v106_v25 = vadd.f32 %v265_v16, %v105_v23  ;;  %v310_v27 = vpop.f32.mrb[3].mxu0  ;;  %v291_v28 = vpack.c.bf16 %v222_v21, %v222_v21  ;;  %v225_v29 = vadd.f32 %v265_v16, %v224_v26  ;;  %v320_v30 = vpop.f32.mrb[3].mxu1 }
  0xe6   :  { %v118_v31 = vshrl.u32 %v289_v24, 16  ;;  %v290_v32 = vpack.c.bf16 %v106_v25, %v106_v25  ;;  %v235_v33 = vshrl.u32 %v291_v28, 16  ;;  %v292_v34 = vpack.c.bf16 %v225_v29, %v225_v29 }
  0xe7   :  { %v121_v36 = vshll.u32 %v289_v24, 16  ;;  %v238_v41 = vshll.u32 %v291_v28, 16 }
  0xe8   :  { %v120_v35 = vrot.slane %v118_v31, 7  ;;  %v126_v37 = vshrl.u32 %v290_v32, 16  ;;  %v237_v40 = vrot.slane %v235_v33, 7  ;;  %v243_v42 = vshrl.u32 %v292_v34, 16 }
  0xe9   :  { %v129_v46 = vshll.u32 %v290_v32, 16  ;;  %v246_v51 = vshll.u32 %v292_v34, 16 }
  0xea   :  { %v123_v43 = vor.u32 %v121_v36, %v120_v35  ;;  %v128_v45 = vrot.slane %v126_v37, 7  ;;  %v240_v47 = vor.u32 %v238_v41, %v237_v40  ;;  %v245_v50 = vrot.slane %v243_v42, 7 }
  0xeb   :  { %v124_v52 = vrot.slane %v120_v35, 4  ;;  %v241_v57 = vrot.slane %v237_v40, 4 }
  0xec   :  { %v141_v53 = vsel %vm410_vm8, %v123_v43, %v140_v39  ;;  %v131_v54 = vor.u32 %v129_v46, %v128_v45  ;;  %v133_v55 = vrot.slane %v128_v45, 4  ;;  %v255_v58 = vsel %vm410_vm8, %v240_v47, %v284_v44 }
  0xed   :  { %142 = vst [vmem:[%s466_s4] sm:$0xf] %v141_v53  ;;  %v248_v59 = vor.u32 %v246_v51, %v245_v50  ;;  %v250_v60 = vrot.slane %v245_v50, 4  ;;  %285 = vst [vmem:[%s466_s4 + $0xc] sm:$0xf] %v255_v58 }
  0xee   :  { %v132_v61 = vsel %vm421_vm9, %v124_v52, %v131_v54  ;;  %v146_v62 = vsel %vm383_vm3, %v133_v55, %v145_v49 }
  0xef   :  { %144 = vst.msk [vmem:[%s466_s4 + $0x4] sm:$0xf] %vm137_vm5, %v132_v61  ;;  %147 = vst [vmem:[%s466_s4 + $0x8] sm:$0x1] %v146_v62  ;;  %v249_v63 = vsel %vm421_vm9, %v241_v57, %v248_v59  ;;  %v259_v0 = vsel %vm383_vm3, %v250_v60, %v287_v56 }
  0xf0   :  { %286 = vst.msk [vmem:[%s466_s4 + $0x10] sm:$0xf] %vm137_vm5, %v249_v63  ;;  %288 = vst [vmem:[%s466_s4 + $0x14] sm:$0x1] %v259_v0 }

</bundles_post_ra>
